<compile_context>
chip_gen: v7x
topology: tpu7x:2x2x1
jax: 0.10.0
libtpu: 0.0.40
codegen_flags: <defaults>
</compile_context>

<pallas_src>
import jax
import jax.numpy as jnp
from jax import lax
from jax.experimental import pallas as pl
from jax.experimental.pallas import tpu as pltpu


def _round_up(n: int, m: int) -> int:
    return ((n + m - 1) // m) * m


def basic_block_kernel(x_ref, w1_ref, b1_ref, w2_ref, b2_ref, o_ref):
    # Contract x's feature dim (1) with W's in_features dim (1): x @ W.T
    # without materializing a transposed weight.
    dn = (((1,), (1,)), ((), ()))

    x = x_ref[...]                                   # native dtype for the MXU
    h = lax.dot_general(x, w1_ref[...], dn,
                        preferred_element_type=jnp.float32)
    h = jnp.maximum(h + b1_ref[...].astype(jnp.float32), 0.0)

    y = lax.dot_general(h.astype(w2_ref.dtype), w2_ref[...], dn,
                        preferred_element_type=jnp.float32)
    # Re-read x for the residual instead of holding an f32 copy live.
    y = y + b2_ref[...].astype(jnp.float32) + x_ref[...].astype(jnp.float32)
    o_ref[...] = jnp.maximum(y, 0.0).astype(o_ref.dtype)


def basic_block(x, w1, b1, w2, b2, *, tm_max=512):
    """x: [B, P]; w1, w2: [P, P] (PyTorch layout: out_features x in_features);
    b1, b2: [P].  Returns relu(relu(x@w1.T+b1)@w2.T+b2 + x)."""
    B, P = x.shape

    # Lane-dense feature dim and sublane/tile-aligned batch dim.
    Pp = _round_up(P, 128)
    tm = min(tm_max, _round_up(B, 8))
    Bp = _round_up(B, tm)

    # Zero-pad to dense shapes.  (In a real model the weight/bias padding
    # would be done once at parameter-init time, not per call.)
    if (Bp, Pp) != (B, P):
        x = jnp.pad(x, ((0, Bp - B), (0, Pp - P)))
    if Pp != P:
        w1 = jnp.pad(w1, ((0, Pp - P), (0, Pp - P)))
        w2 = jnp.pad(w2, ((0, Pp - P), (0, Pp - P)))
        b1 = jnp.pad(b1, ((0, Pp - P),))
        b2 = jnp.pad(b2, ((0, Pp - P),))
    b1 = b1.reshape(1, Pp)
    b2 = b2.reshape(1, Pp)

    grid = (Bp // tm,)
    row_spec = pl.BlockSpec((tm, Pp), lambda i: (i, 0))          # tiled over batch
    resident = lambda shape: pl.BlockSpec(shape, lambda i: (0, 0))  # VMEM-resident

    out = pl.pallas_call(
        basic_block_kernel,
        out_shape=jax.ShapeDtypeStruct((Bp, Pp), x.dtype),
        grid=grid,
        in_specs=[
            row_spec,             # x tile
            resident((Pp, Pp)),   # w1 (PyTorch layout, resident)
            resident((1, Pp)),    # b1
            resident((Pp, Pp)),   # w2
            resident((1, Pp)),    # b2
        ],
        out_specs=row_spec,
        compiler_params=pltpu.CompilerParams(
            # Batch tiles are independent -> shard across v7x's 2 TensorCores.
            dimension_semantics=("parallel",),
            # Safe on all chips (v7x physical VMEM is 64 MiB); plenty for
            # 2 resident PxP weights + double-buffered row tiles at tm<=512.
            vmem_limit_bytes=32 * 1024 * 1024,
        ),
    )(x, w1, b1, w2, b2)

    return out[:B, :P]


def basic_block_ref(x, w1, b1, w2, b2):
    """Pure-JAX reference matching the PyTorch forward exactly."""
    h = jnp.maximum(x @ w1.T + b1, 0.0)
    y = h @ w2.T + b2 + x
    return jnp.maximum(y, 0.0)


if __name__ == "__main__":
    key = jax.random.PRNGKey(0)
    B, planes = 8, 32  # small shapes: batch=8, planes(hidden)=32

    k_x, k_w1, k_b1, k_w2, k_b2 = jax.random.split(key, 5)
    # Deterministic synthetic parameters (PyTorch-Linear-like uniform init).
    bound = 1.0 / (planes ** 0.5)
    x = jax.random.normal(k_x, (B, planes), dtype=jnp.float32)
    w1 = jax.random.uniform(k_w1, (planes, planes), jnp.float32, -bound, bound)
    b1 = jax.random.uniform(k_b1, (planes,), jnp.float32, -bound, bound)
    w2 = jax.random.uniform(k_w2, (planes, planes), jnp.float32, -bound, bound)
    b2 = jax.random.uniform(k_b2, (planes,), jnp.float32, -bound, bound)

    out = basic_block(x, w1, b1, w2, b2)
    jax.block_until_ready(out)

    ref = basic_block_ref(x, w1, b1, w2, b2)
    assert out.shape == (B, planes)
    assert jnp.allclose(out, ref, atol=1e-5, rtol=1e-5), "mismatch vs reference"

    print("KERNEL_OK")
</pallas_src>

<mosaic_0001>
module attributes {stable_mosaic.version = 11 : i64} {
  func.func @basic_block_kernel(%arg0: i32, %arg1: memref<8x128xf32, #tpu.memory_space<vmem>>, %arg2: memref<128x128xf32, #tpu.memory_space<vmem>>, %arg3: memref<1x128xf32, #tpu.memory_space<vmem>>, %arg4: memref<128x128xf32, #tpu.memory_space<vmem>>, %arg5: memref<1x128xf32, #tpu.memory_space<vmem>>, %arg6: memref<8x128xf32, #tpu.memory_space<vmem>>) attributes {dimension_semantics = [#tpu.dimension_semantics<parallel>], iteration_bounds = array<i64: 1>, scalar_prefetch = 0 : i64, scratch_operands = 0 : i64, tpu.core_type = #tpu.core_type<tc>, window_params = [{transform_indices = @transform_0, window_bounds = array<i64: 8, 128>}, {pipeline_mode = #tpu.pipeline_mode<synchronous>, transform_indices = @transform_1, window_bounds = array<i64: 128, 128>}, {pipeline_mode = #tpu.pipeline_mode<synchronous>, transform_indices = @transform_2, window_bounds = array<i64: 1, 128>}, {pipeline_mode = #tpu.pipeline_mode<synchronous>, transform_indices = @transform_3, window_bounds = array<i64: 128, 128>}, {pipeline_mode = #tpu.pipeline_mode<synchronous>, transform_indices = @transform_4, window_bounds = array<i64: 1, 128>}, {transform_indices = @transform_5, window_bounds = array<i64: 8, 128>}]} {
    %c0 = arith.constant 0 : index
    %c0_0 = arith.constant 0 : index
    %0 = vector.load %arg1[%c0, %c0_0] : memref<8x128xf32, #tpu.memory_space<vmem>>, vector<8x128xf32>
    %c0_1 = arith.constant 0 : index
    %c0_2 = arith.constant 0 : index
    %1 = vector.load %arg2[%c0_1, %c0_2] : memref<128x128xf32, #tpu.memory_space<vmem>>, vector<128x128xf32>
    %cst = arith.constant dense<0.000000e+00> : vector<8x128xf32>
    %2 = tpu.matmul %0, %1, %cst {dimension_numbers = #tpu.dot_dimension_numbers<[1], [1], [0], [0], [0, 0, 1, 0], [], []>} : vector<8x128xf32>, vector<128x128xf32>, vector<8x128xf32> -> vector<8x128xf32>
    %c0_3 = arith.constant 0 : index
    %c0_4 = arith.constant 0 : index
    %3 = vector.load %arg3[%c0_3, %c0_4] : memref<1x128xf32, #tpu.memory_space<vmem>>, vector<1x128xf32>
    %4 = vector.broadcast %3 : vector<1x128xf32> to vector<8x128xf32>
    %5 = arith.addf %2, %4 : vector<8x128xf32>
    %cst_5 = arith.constant 0.000000e+00 : f32
    %6 = vector.broadcast %cst_5 : f32 to vector<8x128xf32>
    %7 = arith.maximumf %5, %6 : vector<8x128xf32>
    %c0_6 = arith.constant 0 : index
    %c0_7 = arith.constant 0 : index
    %8 = vector.load %arg4[%c0_6, %c0_7] : memref<128x128xf32, #tpu.memory_space<vmem>>, vector<128x128xf32>
    %cst_8 = arith.constant dense<0.000000e+00> : vector<8x128xf32>
    %9 = tpu.matmul %7, %8, %cst_8 {dimension_numbers = #tpu.dot_dimension_numbers<[1], [1], [0], [0], [0, 0, 1, 0], [], []>} : vector<8x128xf32>, vector<128x128xf32>, vector<8x128xf32> -> vector<8x128xf32>
    %c0_9 = arith.constant 0 : index
    %c0_10 = arith.constant 0 : index
    %10 = vector.load %arg5[%c0_9, %c0_10] : memref<1x128xf32, #tpu.memory_space<vmem>>, vector<1x128xf32>
    %11 = vector.broadcast %10 : vector<1x128xf32> to vector<8x128xf32>
    %12 = arith.addf %9, %11 : vector<8x128xf32>
    %c0_11 = arith.constant 0 : index
    %c0_12 = arith.constant 0 : index
    %13 = vector.load %arg1[%c0_11, %c0_12] : memref<8x128xf32, #tpu.memory_space<vmem>>, vector<8x128xf32>
    %14 = arith.addf %12, %13 : vector<8x128xf32>
    %cst_13 = arith.constant 0.000000e+00 : f32
    %15 = vector.broadcast %cst_13 : f32 to vector<8x128xf32>
    %16 = arith.maximumf %14, %15 : vector<8x128xf32>
    %c0_14 = arith.constant 0 : index
    %c0_15 = arith.constant 0 : index
    %17 = vector.load %arg6[%c0_14, %c0_15] : memref<8x128xf32, #tpu.memory_space<vmem>>, vector<8x128xf32>
    tpu.vector_store %arg6[%c0_14, %c0_15], %16 {strides = array<i32>} : memref<8x128xf32, #tpu.memory_space<vmem>>, vector<8x128xf32>,
    return
  }
  func.func @transform_0(%arg0: i32) -> (i32, i32) {
    %c0_i32 = arith.constant 0 : i32
    %c0_i32_0 = arith.constant 0 : i32
    return %arg0, %c0_i32 : i32, i32
  }
  func.func @transform_1(%arg0: i32) -> (i32, i32) {
    %c0_i32 = arith.constant 0 : i32
    %c0_i32_0 = arith.constant 0 : i32
    %c0_i32_1 = arith.constant 0 : i32
    return %c0_i32, %c0_i32_0 : i32, i32
  }
  func.func @transform_2(%arg0: i32) -> (i32, i32) {
    %c0_i32 = arith.constant 0 : i32
    %c0_i32_0 = arith.constant 0 : i32
    %c0_i32_1 = arith.constant 0 : i32
    return %c0_i32, %c0_i32_0 : i32, i32
  }
  func.func @transform_3(%arg0: i32) -> (i32, i32) {
    %c0_i32 = arith.constant 0 : i32
    %c0_i32_0 = arith.constant 0 : i32
    %c0_i32_1 = arith.constant 0 : i32
    return %c0_i32, %c0_i32_0 : i32, i32
  }
  func.func @transform_4(%arg0: i32) -> (i32, i32) {
    %c0_i32 = arith.constant 0 : i32
    %c0_i32_0 = arith.constant 0 : i32
    %c0_i32_1 = arith.constant 0 : i32
    return %c0_i32, %c0_i32_0 : i32, i32
  }
  func.func @transform_5(%arg0: i32) -> (i32, i32) {
    %c0_i32 = arith.constant 0 : i32
    %c0_i32_0 = arith.constant 0 : i32
    return %arg0, %c0_i32 : i32, i32
  }
}

</mosaic_0001>

<bundles_post_ra>
// kernel: tpu_custom_call.1
= control target key start
LH: loop header
LB: loop body
LE: loop exit
PB: predicated region body
PF: predicated region fallthrough
CT: control target
= control target key end

     0   :  { %10 = vsyncpa [#allocation3], 0  ;;  %s639_s0 = inlined_call_operand.hbm [shape: f32[8,128], index: 0, kind: input, shape index: {}]   ;;  %s640_s1 = inlined_call_operand.hbm [shape: f32[128,128], index: 1, kind: input, shape index: {}]   ;;  %s641_s2 = inlined_call_operand.vmem [shape: f32[1,128], index: 2, kind: input, shape index: {}]   ;;  %s642_s3 = inlined_call_operand.hbm [shape: f32[128,128], index: 3, kind: input, shape index: {}]   ;;  %s643_s4 = inlined_call_operand.vmem [shape: f32[1,128], index: 4, kind: input, shape index: {}]   ;;  %s644_s5 = inlined_call_operand.hbm [shape: f32[8,128], index: 5, kind: output, shape index: {}]  }
   0x1   :  { %11 = vsyncpa [#allocation6], 0 }
   0x2   :  { %12 = vsyncpa [#allocation4], 0  ;;  %s524_s18 = smov [#allocation5]   ;;  %s430_s22 = scalar_lea.hbm %s640_s1, 2048 }
   0x3   :  { %s28_s19 = sshll.u32 %s524_s18, 4  ;;  %p431_p0 = scmp.ne.s32.totalorder %s640_s1, %s430_s22  ;;  %s29_s19 = int_to_ptr.vmem [resolvable:$true] %s28_s19 }
   0x4   :  { %p434_p1 = scmp.lt.u32.totalorder %s430_s22, %s640_s1 }
   0x6   :  { %p436_p2 = pnand %p434_p1, %p431_p0 }
   0x8   :  { %439 = shalt.err (!%p436_p2)
}
   0x9   :  { %s440_s27 = scalar_lea.vmem %s29_s19, 2048  ;;  %p445_p4 = scmp.lt.s32.totalorder %s29_s19, %s29_s19 }
   0xa   :  { %p441_p3 = scmp.ne.s32.totalorder %s29_s19, %s440_s27  ;;  %p446_p5 = scmp.lt.s32.totalorder %s440_s27, %s440_s27 }
   0xc   :  { %p447_p6 = por %p446_p5, %p445_p4 }
   0xe   :  { %p448_p7 = pnand %p447_p6, %p441_p3 }
  0x10   :  { %451 = shalt.err (!%p448_p7)
}
  0x11   :  { %s525_s28 = smov 128   ;;  %s526_s29 = smov 8  }
  0x12   :  { %34 = dma.hbm_to_vmem [thread:$0]  %s640_s1, 2048, %s29_s19, [#allocation6], %s525_s28, %s525_s28, %s526_s29  }
  0x13   :  { %s527_s7 = smov [#allocation2]   ;;  %s528_s9 = smov [#allocation7]  }
  0x14   :  { %s19_s8 = sshll.u32 %s527_s7, 4  ;;  %s42_s10 = sshll.u32 %s528_s9, 4  ;;  %s20_s8 = int_to_ptr.vmem [resolvable:$true] %s19_s8  ;;  %s43_s10 = int_to_ptr.vmem [resolvable:$true] %s42_s10 }
  0x15   :  { %s452_s13 = scalar_lea.hbm %s639_s0, 128 }
  0x16   :  { %p453_p8 = scmp.ne.s32.totalorder %s639_s0, %s452_s13  ;;  %p456_p9 = scmp.lt.u32.totalorder %s452_s13, %s639_s0 }
  0x18   :  { %p458_p10 = pnand %p456_p9, %p453_p8 }
  0x1a   :  { %461 = shalt.err (!%p458_p10)
}
  0x1b   :  { %s462_s1 = scalar_lea.vmem %s20_s8, 128  ;;  %p467_p12 = scmp.lt.s32.totalorder %s20_s8, %s20_s8 }
  0x1c   :  { %p463_p11 = scmp.ne.s32.totalorder %s20_s8, %s462_s1  ;;  %p468_p13 = scmp.lt.s32.totalorder %s462_s1, %s462_s1 }
  0x1e   :  { %p469_p0 = por %p468_p13, %p467_p12 }
  0x20   :  { %p470_p1 = pnand %p469_p0, %p463_p11 }
  0x22   :  { %473 = shalt.err (!%p470_p1)
}
  0x23   :  { %22 = dma.hbm_to_vmem [thread:$0]  %s639_s0, 128, %s20_s8, [#allocation3]  }
  0x24   :  { %s474_s22 = scalar_lea.hbm %s642_s3, 2048 }
  0x25   :  { %p475_p2 = scmp.ne.s32.totalorder %s642_s3, %s474_s22  ;;  %p478_p3 = scmp.lt.u32.totalorder %s474_s22, %s642_s3 }
  0x27   :  { %p480_p4 = pnand %p478_p3, %p475_p2 }
  0x29   :  { %483 = shalt.err (!%p480_p4)
}
  0x2a   :  { %s484_s27 = scalar_lea.vmem %s43_s10, 2048  ;;  %p489_p6 = scmp.lt.s32.totalorder %s43_s10, %s43_s10 }
  0x2b   :  { %p485_p5 = scmp.ne.s32.totalorder %s43_s10, %s484_s27  ;;  %p490_p7 = scmp.lt.s32.totalorder %s484_s27, %s484_s27 }
  0x2d   :  { %p491_p8 = por %p490_p7, %p489_p6 }
  0x2f   :  { %p492_p9 = pnand %p491_p8, %p485_p5 }
  0x31   :  { %495 = shalt.err (!%p492_p9)
}
  0x32   :  { %48 = dma.hbm_to_vmem [thread:$0]  %s642_s3, 2048, %s43_s10, [#allocation6], %s525_s28, %s525_s28, %s526_s29  }
  0x33   :  { %518 = dma.done.wait [#allocation3], 128  }
  0x34   :  { %519 = vsyncadd [#allocation3], 4294967168 }
  0x35   :  { %520 = dma.done.wait [#allocation6], 4096  }
  0x36   :  { %521 = vsyncadd [#allocation6], 4294963200  ;;  %v529_v0 = vmov 0.0|0.0   ;;  %vm530_vm0 = vmmov 0   ;;  %v531_v1 = vmov 0.0   ;;  %v61_v2 = vld [vmem:[#allocation5] sm:$0xff] }
  0x37   :  { %373 = vmatprep.subr.bf16.mxu0 %v529_v0  ;;  %335 = vmatprep.mubr.msk.f32.mxu0 %vm530_vm0, %v531_v1  ;;  %v62_v3 = vld [vmem:[#allocation5 + $0x8] sm:$0xff]  ;;  %v63_v5 = vld [vmem:[#allocation5 + $0x10] sm:$0xff]  ;;  %v64_v6 = vld [vmem:[#allocation5 + $0x18] sm:$0xff]  ;;  %s532_s7 = smov [#allocation8]  }
  0x38   :  { %397 = vmatprep.subr.bf16.mxu1 %v529_v0  ;;  %370 = vmatprep.mubr.msk.f32.mxu1 %vm530_vm0, %v531_v1  ;;  %v374_v4 = vpack.c.bf16 %v62_v3, %v61_v2  ;;  %v155_v7 = vld [vmem:[#allocation7] sm:$0xff]  ;;  %v156_v8 = vld [vmem:[#allocation7 + $0x8] sm:$0xff]  ;;  %v377_v9 = vpack.c.bf16 %v64_v6, %v63_v5  ;;  %v157_v11 = vld [vmem:[#allocation7 + $0x10] sm:$0xff]  ;;  %s257_s8 = sshll.u32 %s532_s7, 4  ;;  %s258_s8 = int_to_ptr.vmem [resolvable:$true] %s257_s8 }
  0x39   :  { %v398_v10 = vpack.c.bf16 %v156_v8, %v155_v7  ;;  %v158_v12 = vld [vmem:[#allocation7 + $0x18] sm:$0xff]  ;;  %v65_v13 = vld [vmem:[#allocation5 + $0x20] sm:$0xff]  ;;  %v66_v14 = vld [vmem:[#allocation5 + $0x28] sm:$0xff]  ;;  %s496_s9 = scalar_lea.vmem %s258_s8, 128  ;;  %p501_p11 = scmp.lt.s32.totalorder %s258_s8, %s258_s8 }
  0x3a   :  { %375 = vmatpush3.bf16.xpose.msra.mxu0 %v374_v4  ;;  %v401_v15 = vpack.c.bf16 %v158_v12, %v157_v11  ;;  %v380_v16 = vpack.c.bf16 %v66_v14, %v65_v13  ;;  %v159_v17 = vld [vmem:[#allocation7 + $0x20] sm:$0xff]  ;;  %v160_v18 = vld [vmem:[#allocation7 + $0x28] sm:$0xff]  ;;  %v67_v19 = vld [vmem:[#allocation5 + $0x30] sm:$0xff]  ;;  %p497_p10 = scmp.ne.s32.totalorder %s258_s8, %s496_s9  ;;  %p502_p12 = scmp.lt.s32.totalorder %s496_s9, %s496_s9 }
  0x3b   :  { %376 = vmatprep.subr.bf16.mxu0 %v529_v0  ;;  %399 = vmatpush3.bf16.xpose.msra.mxu1 %v398_v10  ;;  %v68_v20 = vld [vmem:[#allocation5 + $0x38] sm:$0xff]  ;;  %v404_v21 = vpack.c.bf16 %v160_v18, %v159_v17  ;;  %v161_v23 = vld [vmem:[#allocation7 + $0x30] sm:$0xff]  ;;  %v69_v25 = vld [vmem:[#allocation5 + $0x40] sm:$0xff] }
  0x3c   :  { %400 = vmatprep.subr.bf16.mxu1 %v529_v0  ;;  %v383_v22 = vpack.c.bf16 %v68_v20, %v67_v19  ;;  %v162_v24 = vld [vmem:[#allocation7 + $0x38] sm:$0xff]  ;;  %v70_v26 = vld [vmem:[#allocation5 + $0x48] sm:$0xff]  ;;  %v163_v29 = vld [vmem:[#allocation7 + $0x40] sm:$0xff]  ;;  %p503_p13 = por %p502_p12, %p501_p11 }
  0x3d   :  { %v407_v27 = vpack.c.bf16 %v162_v24, %v161_v23  ;;  %v386_v28 = vpack.c.bf16 %v70_v26, %v69_v25  ;;  %v164_v30 = vld [vmem:[#allocation7 + $0x48] sm:$0xff]  ;;  %v71_v31 = vld [vmem:[#allocation5 + $0x50] sm:$0xff]  ;;  %v72_v32 = vld [vmem:[#allocation5 + $0x58] sm:$0xff] }
  0x3e   :  { %v410_v33 = vpack.c.bf16 %v164_v30, %v163_v29  ;;  %v389_v34 = vpack.c.bf16 %v72_v32, %v71_v31  ;;  %v165_v35 = vld [vmem:[#allocation7 + $0x50] sm:$0xff]  ;;  %v166_v36 = vld [vmem:[#allocation7 + $0x58] sm:$0xff]  ;;  %v73_v37 = vld [vmem:[#allocation5 + $0x60] sm:$0xff]  ;;  %p504_p0 = pnand %p503_p13, %p497_p10 }
  0x3f   :  { %v74_v38 = vld [vmem:[#allocation5 + $0x68] sm:$0xff]  ;;  %v413_v39 = vpack.c.bf16 %v166_v36, %v165_v35  ;;  %v167_v41 = vld [vmem:[#allocation7 + $0x60] sm:$0xff]  ;;  %v75_v43 = vld [vmem:[#allocation5 + $0x70] sm:$0xff] }
  0x40   :  { %v392_v40 = vpack.c.bf16 %v74_v38, %v73_v37  ;;  %v168_v42 = vld [vmem:[#allocation7 + $0x68] sm:$0xff]  ;;  %v76_v44 = vld [vmem:[#allocation5 + $0x78] sm:$0xff]  ;;  %v169_v47 = vld [vmem:[#allocation7 + $0x70] sm:$0xff] }
  0x41   :  { %v416_v45 = vpack.c.bf16 %v168_v42, %v167_v41  ;;  %v395_v46 = vpack.c.bf16 %v76_v44, %v75_v43  ;;  %v170_v48 = vld [vmem:[#allocation7 + $0x78] sm:$0xff] }
  0x42   :  { %378 = vmatpush3.bf16.xpose.msra.mxu0 %v377_v9  ;;  %v419_v49 = vpack.c.bf16 %v170_v48, %v169_v47  ;;  %v60_v50 = vld [vmem:[#allocation2] sm:$0xff] }
  0x43   :  { %379 = vmatprep.subr.bf16.mxu0 %v529_v0  ;;  %402 = vmatpush3.bf16.xpose.msra.mxu1 %v401_v15  ;;  %v267_v51 = vld [vmem:[%s641_s2] ss:$0 sm:$0xff] }
  0x44   :  { %403 = vmatprep.subr.bf16.mxu1 %v529_v0  ;;  %v268_v56 = vld [vmem:[%s643_s4] ss:$0 sm:$0xff] }
  0x4a   :  { %381 = vmatpush3.bf16.xpose.msra.mxu0 %v380_v16 }
  0x4b   :  { %382 = vmatprep.subr.bf16.mxu0 %v529_v0  ;;  %405 = vmatpush3.bf16.xpose.msra.mxu1 %v404_v21 }
  0x4c   :  { %406 = vmatprep.subr.bf16.mxu1 %v529_v0 }
  0x52   :  { %384 = vmatpush3.bf16.xpose.msra.mxu0 %v383_v22 }
  0x53   :  { %385 = vmatprep.subr.bf16.mxu0 %v529_v0  ;;  %408 = vmatpush3.bf16.xpose.msra.mxu1 %v407_v27 }
  0x54   :  { %409 = vmatprep.subr.bf16.mxu1 %v529_v0 }
  0x5a   :  { %387 = vmatpush3.bf16.xpose.msra.mxu0 %v386_v28 }
  0x5b   :  { %388 = vmatprep.subr.bf16.mxu0 %v529_v0  ;;  %411 = vmatpush3.bf16.xpose.msra.mxu1 %v410_v33 }
  0x5c   :  { %412 = vmatprep.subr.bf16.mxu1 %v529_v0 }
  0x62   :  { %390 = vmatpush3.bf16.xpose.msra.mxu0 %v389_v34 }
  0x63   :  { %391 = vmatprep.subr.bf16.mxu0 %v529_v0  ;;  %414 = vmatpush3.bf16.xpose.msra.mxu1 %v413_v39 }
  0x64   :  { %415 = vmatprep.subr.bf16.mxu1 %v529_v0 }
  0x6a   :  { %393 = vmatpush3.bf16.xpose.msra.mxu0 %v392_v40 }
  0x6b   :  { %394 = vmatprep.subr.bf16.mxu0 %v529_v0  ;;  %417 = vmatpush3.bf16.xpose.msra.mxu1 %v416_v45 }
  0x6c   :  { %418 = vmatprep.subr.bf16.mxu1 %v529_v0 }
  0x72   :  { %396 = vmatpush3.bf16.xpose.msra.mxu0 %v395_v46 }
  0x73   :  { %420 = vmatpush3.bf16.xpose.msra.mxu1 %v419_v49 }
  0x79   :  { %336 = vmatmul.mubr.f32.vlgmr.msra.gmra.mrb[0].mxu0 %v60_v50 }
 0x14c   :  { %v150_v52 = vpop.f32.mrb[0].mxu0 }
 0x14d   :  { %v151_v53 = vadd.f32 %v267_v51, %v150_v52  ;;  %v337_v54 = vpop.f32.mrb[1].mxu0 }
 0x14f   :  { %v154_v55 = vmax.f32 %v151_v53, 0.0 }
 0x151   :  { %371 = vmatmul.mubr.f32.vlgmr.msra.gmra.mrb[0].mxu1 %v154_v55 }
 0x224   :  { %v244_v57 = vpop.f32.mrb[0].mxu1 }
 0x225   :  { %v245_v58 = vadd.f32 %v268_v56, %v244_v57  ;;  %v372_v59 = vpop.f32.mrb[1].mxu1 }
 0x227   :  { %v248_v60 = vadd.f32 %v245_v58, %v60_v50 }
 0x229   :  { %v249_v61 = vmax.f32 %v248_v60, 0.0 }
 0x22b   :  { %250 = vst [vmem:[#allocation8] sm:$0xff] %v249_v61 }
 0x22c   :  { %507 = shalt.err (!%p504_p0)
}
 0x22d   :  { %s508_s4 = scalar_lea.hbm %s644_s5, 128 }
 0x22e   :  { %p509_p1 = scmp.ne.s32.totalorder %s644_s5, %s508_s4  ;;  %p512_p2 = scmp.lt.u32.totalorder %s508_s4, %s644_s5 }
 0x230   :  { %p514_p3 = pnand %p512_p2, %p509_p1 }
 0x232   :  { %517 = shalt.err (!%p514_p3)
}
 0x233   :  { %260 = dma.vmem_to_hbm [thread:$0]  %s258_s8, 128, %s644_s5, [#allocation4]  }
 0x234   :  { %522 = dma.done.wait [#allocation4], 128  }
 0x235   :  { %523 = vsyncadd [#allocation4], 4294967168 }
 0x236   :  { %264 = vsyncpa [#allocation3], 1 }
 0x237   :  { %265 = vsyncpa [#allocation6], 1 }
 0x238   :  { %266 = vsyncpa [#allocation4], 1 }

</bundles_post_ra>
